<compile_context>
chip_gen: v7x
topology: tpu7x:2x2x1
jax: 0.10.0
libtpu: 0.0.40
codegen_flags: <defaults>
</compile_context>

<pallas_src>
import functools

import jax
import jax.numpy as jnp
from jax import lax
from jax.experimental import pallas as pl
from jax.experimental.pallas import tpu as pltpu


def _round_up(x, m):
    return (x + m - 1) // m * m


def _resblock_kernel(x_ref, w1_ref, b1_ref, w2_ref, b2_ref, out_ref, f_ref,
                     *, W, base):
    # x_ref  : (C, M)     flat image for this batch element, M = H*W
    # w*_ref : (9, C, C)  tap matrices, index = kh*3 + kw, laid out [c_out, c_in]
    # b*_ref : (C, 1)
    # out_ref: (C, M)
    # f_ref  : (C, LB)    VMEM scratch: flat image with zero halo columns on
    #                     both sides; reused to hold relu(conv1(x)) for conv2.
    C, M = x_ref.shape
    LB = f_ref.shape[1]

    # Zero only the halo columns (interior is fully overwritten right after).
    f_ref[:, :base] = jnp.zeros((C, base), jnp.float32)
    f_ref[:, base + M:] = jnp.zeros((C, LB - base - M), jnp.float32)
    f_ref[:, base:base + M] = x_ref[...]

    # Hoisted column-validity masks, shared by both convs / all kernel rows.
    col = lax.broadcasted_iota(jnp.int32, (1, M), 1) % W
    not_left = (col != 0).astype(jnp.float32)        # reading column w-1 is valid
    not_right = (col != W - 1).astype(jnp.float32)   # reading column w+1 is valid

    def conv3x3(fv, w_ref, b_ref):
        # fv: (C, LB) value holding the zero-haloed flat input of this conv.
        # One partial accumulator per kernel column (kw) -> 3 short dependency
        # chains instead of one serial chain of 9 accumulations.
        parts = []
        for t in range(3):
            acc = None
            for s in range(3):
                d = (s - 1) * W + (t - 1)            # flat tap offset
                shifted = fv if d == 0 else pltpu.roll(fv, shift=(-d) % LB, axis=1)
                slab = shifted[:, base:base + M]      # (C, M), aligned slice
                p = jnp.dot(w_ref[3 * s + t], slab,
                            preferred_element_type=jnp.float32)   # (C, M) on MXU
                acc = p if acc is None else acc + p
            if t == 0:
                acc = acc * not_left
            elif t == 2:
                acc = acc * not_right
            parts.append(acc)
        return jnp.maximum(parts[0] + parts[1] + parts[2] + b_ref[...], 0.0)

    y1 = conv3x3(f_ref[...], w1_ref, b1_ref)
    f_ref[:, base:base + M] = y1                      # halo columns are still zero
    y2 = conv3x3(f_ref[...], w2_ref, b2_ref)

    out_ref[...] = (x_ref[...] + y2).astype(out_ref.dtype)


def resblock_forward(x_nchw, w1, b1, w2, b2):
    """ResBlock forward.  x_nchw: (N, C, H, W); weights in PyTorch OIHW layout."""
    N, C, H, W = x_nchw.shape
    M = H * W
    base = _round_up(W + 1, 128)                 # left halo width, lane-aligned
    LB = _round_up(base + M + W + 1, 128)        # flat width incl. both halos

    x_flat = x_nchw.reshape(N, C, M).astype(jnp.float32)       # free reshape

    def prep_w(w):   # (Cout, Cin, 3, 3) -> (9, Cout, Cin), tap index = kh*3 + kw
        return jnp.transpose(w, (2, 3, 0, 1)).reshape(9, C, C).astype(jnp.float32)

    w1k, w2k = prep_w(w1), prep_w(w2)
    b1k = b1.reshape(C, 1).astype(jnp.float32)
    b2k = b2.reshape(C, 1).astype(jnp.float32)

    # Explicit VMEM budget (v5e's default scoped limit is only 16 MiB).
    def padded_bytes(r, c):
        return _round_up(r, 8) * _round_up(c, 128) * 4
    est = (2 * 2 * padded_bytes(C, M)            # x + out, double-buffered
           + 2 * 2 * 9 * padded_bytes(C, C)      # w1 + w2, double-buffered
           + 2 * 2 * padded_bytes(C, 1)          # biases
           + padded_bytes(C, LB)                 # scratch
           + (1 << 20))                          # headroom
    vmem_limit = int(min(max(est, 32 * 1024 * 1024), 64 * 1024 * 1024))

    kernel = functools.partial(_resblock_kernel, W=W, base=base)

    out_flat = pl.pallas_call(
        kernel,
        out_shape=jax.ShapeDtypeStruct((N, C, M), jnp.float32),
        grid=(N,),
        in_specs=[
            pl.BlockSpec((None, C, M), lambda n: (n, 0, 0)),
            pl.BlockSpec((9, C, C), lambda n: (0, 0, 0)),
            pl.BlockSpec((C, 1), lambda n: (0, 0)),
            pl.BlockSpec((9, C, C), lambda n: (0, 0, 0)),
            pl.BlockSpec((C, 1), lambda n: (0, 0)),
        ],
        out_specs=pl.BlockSpec((None, C, M), lambda n: (n, 0, 0)),
        scratch_shapes=[pltpu.VMEM((C, LB), jnp.float32)],
        compiler_params=pltpu.CompilerParams(
            dimension_semantics=("parallel",),   # megacore: shard batch on v7x
            vmem_limit_bytes=vmem_limit),
    )(x_flat, w1k, b1k, w2k, b2k)

    return out_flat.reshape(N, C, H, W)


def ref_resblock(x, w1, b1, w2, b2):
    """Pure-JAX reference matching the PyTorch module (NCHW / OIHW)."""
    def conv(h, w, b):
        y = lax.conv_general_dilated(
            h, w, window_strides=(1, 1), padding="SAME",
            dimension_numbers=("NCHW", "OIHW", "NCHW"))
        return y + b[None, :, None, None]

    y = jax.nn.relu(conv(x, w1, b1))
    y = jax.nn.relu(conv(y, w2, b2))
    return x + y


if __name__ == "__main__":
    key = jax.random.PRNGKey(0)
    kx, k1, k2, k3, k4 = jax.random.split(key, 5)

    # ResBlock(size=8) on a small NCHW input, like the PyTorch module.
    N, C, H, W = 2, 8, 16, 16
    x = jax.random.normal(kx, (N, C, H, W), jnp.float32)
    w1 = jax.random.normal(k1, (C, C, 3, 3), jnp.float32) * 0.1   # conv1.weight
    b1 = jax.random.normal(k2, (C,), jnp.float32) * 0.1           # conv1.bias
    w2 = jax.random.normal(k3, (C, C, 3, 3), jnp.float32) * 0.1   # conv2.weight
    b2 = jax.random.normal(k4, (C,), jnp.float32) * 0.1           # conv2.bias

    out = jax.block_until_ready(resblock_forward(x, w1, b1, w2, b2))

    ref = ref_resblock(x, w1, b1, w2, b2)
    assert out.shape == ref.shape == (N, C, H, W)
    if not jnp.allclose(out, ref, atol=2e-4, rtol=2e-4):
        err = jnp.max(jnp.abs(out - ref))
        raise AssertionError(f"Pallas ResBlock mismatch, max abs err = {err}")

    print("KERNEL_OK")
</pallas_src>

<mosaic_0001>
module attributes {stable_mosaic.version = 11 : i64} {
  func.func @_resblock_kernel(%arg0: i32, %arg1: memref<1x8x256xf32, #tpu.memory_space<vmem>>, %arg2: memref<9x8x8xf32, #tpu.memory_space<vmem>>, %arg3: memref<8x1xf32, #tpu.memory_space<vmem>>, %arg4: memref<9x8x8xf32, #tpu.memory_space<vmem>>, %arg5: memref<8x1xf32, #tpu.memory_space<vmem>>, %arg6: memref<1x8x256xf32, #tpu.memory_space<vmem>>, %arg7: memref<8x512xf32, #tpu.memory_space<vmem>>) attributes {dimension_semantics = [#tpu.dimension_semantics<parallel>], iteration_bounds = array<i64: 2>, scalar_prefetch = 0 : i64, scratch_operands = 1 : i64, tpu.core_type = #tpu.core_type<tc>, window_params = [{transform_indices = @transform_0, window_bounds = array<i64: 1, 8, 256>}, {pipeline_mode = #tpu.pipeline_mode<synchronous>, transform_indices = @transform_1, window_bounds = array<i64: 9, 8, 8>}, {pipeline_mode = #tpu.pipeline_mode<synchronous>, transform_indices = @transform_2, window_bounds = array<i64: 8, 1>}, {pipeline_mode = #tpu.pipeline_mode<synchronous>, transform_indices = @transform_3, window_bounds = array<i64: 9, 8, 8>}, {pipeline_mode = #tpu.pipeline_mode<synchronous>, transform_indices = @transform_4, window_bounds = array<i64: 8, 1>}, {transform_indices = @transform_5, window_bounds = array<i64: 1, 8, 256>}]} {
    %cst = arith.constant 0.000000e+00 : f32
    %0 = vector.broadcast %cst : f32 to vector<8x128xf32>
    %c0 = arith.constant 0 : index
    %c0_0 = arith.constant 0 : index
    %1 = vector.load %arg7[%c0, %c0_0] : memref<8x512xf32, #tpu.memory_space<vmem>>, vector<8x128xf32>
    tpu.vector_store %arg7[%c0, %c0_0], %0 {strides = array<i32>} : memref<8x512xf32, #tpu.memory_space<vmem>>, vector<8x128xf32>,
    %cst_1 = arith.constant 0.000000e+00 : f32
    %2 = vector.broadcast %cst_1 : f32 to vector<8x128xf32>
    %c0_2 = arith.constant 0 : index
    %c384 = arith.constant 384 : index
    %3 = vector.load %arg7[%c0_2, %c384] : memref<8x512xf32, #tpu.memory_space<vmem>>, vector<8x128xf32>
    tpu.vector_store %arg7[%c0_2, %c384], %2 {strides = array<i32>} : memref<8x512xf32, #tpu.memory_space<vmem>>, vector<8x128xf32>,
    %c0_3 = arith.constant 0 : index
    %c0_4 = arith.constant 0 : index
    %c0_5 = arith.constant 0 : index
    %4 = vector.load %arg1[%c0_3, %c0_4, %c0_5] : memref<1x8x256xf32, #tpu.memory_space<vmem>>, vector<1x8x256xf32>
    %5 = vector.shape_cast %4 : vector<1x8x256xf32> to vector<8x256xf32>
    %c0_6 = arith.constant 0 : index
    %c128 = arith.constant 128 : index
    %6 = vector.load %arg7[%c0_6, %c128] : memref<8x512xf32, #tpu.memory_space<vmem>>, vector<8x256xf32>
    tpu.vector_store %arg7[%c0_6, %c128], %5 {strides = array<i32>} : memref<8x512xf32, #tpu.memory_space<vmem>>, vector<8x256xf32>,
    %7 = tpu.iota {dimensions = array<i32: 1>} : vector<1x256xi32>
    %c16_i32 = arith.constant 16 : i32
    %c0_i32 = arith.constant 0 : i32
    %8 = arith.cmpi eq, %c16_i32, %c0_i32 : i32
    %c1_i32 = arith.constant 1 : i32
    %9 = arith.select %8, %c1_i32, %c16_i32 : i32
    %10 = vector.broadcast %9 : i32 to vector<1x256xi32>
    %11 = arith.remsi %7, %10 : vector<1x256xi32>
    %c0_i32_7 = arith.constant 0 : i32
    %12 = vector.broadcast %c0_i32_7 : i32 to vector<1x256xi32>
    %13 = arith.cmpi ne, %11, %12 : vector<1x256xi32>
    %c0_i32_8 = arith.constant 0 : i32
    %14 = vector.broadcast %c0_i32_8 : i32 to vector<1x256xi32>
    %15 = arith.cmpi slt, %11, %14 : vector<1x256xi32>
    %c0_i32_9 = arith.constant 0 : i32
    %16 = arith.cmpi slt, %9, %c0_i32_9 : i32
    %17 = vector.broadcast %16 : i1 to vector<1x256xi1>
    %18 = vector.broadcast %17 : vector<1x256xi1> to vector<1x256xi1>
    %19 = arith.xori %15, %18 : vector<1x256xi1>
    %20 = arith.andi %19, %13 : vector<1x256xi1>
    %21 = vector.broadcast %9 : i32 to vector<1x256xi32>
    %22 = arith.addi %11, %21 : vector<1x256xi32>
    %23 = arith.select %20, %22, %11 : vector<1x256xi1>, vector<1x256xi32>
    %c0_i32_10 = arith.constant 0 : i32
    %24 = vector.broadcast %c0_i32_10 : i32 to vector<1x256xi32>
    %25 = arith.cmpi ne, %23, %24 : vector<1x256xi32>
    %26 = arith.extui %25 : vector<1x256xi1> to vector<1x256xi32>
    %27 = arith.sitofp %26 : vector<1x256xi32> to vector<1x256xf32>
    %c15_i32 = arith.constant 15 : i32
    %28 = vector.broadcast %c15_i32 : i32 to vector<1x256xi32>
    %29 = arith.cmpi ne, %23, %28 : vector<1x256xi32>
    %30 = arith.extui %29 : vector<1x256xi1> to vector<1x256xi32>
    %31 = arith.sitofp %30 : vector<1x256xi32> to vector<1x256xf32>
    %c0_11 = arith.constant 0 : index
    %c0_12 = arith.constant 0 : index
    %32 = vector.load %arg7[%c0_11, %c0_12] : memref<8x512xf32, #tpu.memory_space<vmem>>, vector<8x512xf32>
    %c17_i32 = arith.constant 17 : i32
    %33 = tpu.dynamic_rotate %32 by %c17_i32 dim 1 : vector<8x512xf32>, i32 -> vector<8x512xf32>
    %34 = vector.extract_strided_slice %33 {offsets = [0, 128], sizes = [8, 256], strides = [1, 1]} : vector<8x512xf32> to vector<8x256xf32>
    %c0_13 = arith.constant 0 : index
    %c0_14 = arith.constant 0 : index
    %c0_15 = arith.constant 0 : index
    %35 = vector.load %arg2[%c0_13, %c0_14, %c0_15] : memref<9x8x8xf32, #tpu.memory_space<vmem>>, vector<1x8x8xf32>
    %36 = vector.shape_cast %35 : vector<1x8x8xf32> to vector<8x8xf32>
    %cst_16 = arith.constant dense<0.000000e+00> : vector<8x256xf32>
    %37 = tpu.matmul %36, %34, %cst_16 {dimension_numbers = #tpu.dot_dimension_numbers<[1], [0], [0], [1], [0, 0, 1, 1], [], []>} : vector<8x8xf32>, vector<8x256xf32>, vector<8x256xf32> -> vector<8x256xf32>
    %c1_i32_17 = arith.constant 1 : i32
    %38 = tpu.dynamic_rotate %32 by %c1_i32_17 dim 1 : vector<8x512xf32>, i32 -> vector<8x512xf32>
    %39 = vector.extract_strided_slice %38 {offsets = [0, 128], sizes = [8, 256], strides = [1, 1]} : vector<8x512xf32> to vector<8x256xf32>
    %c3 = arith.constant 3 : index
    %c0_18 = arith.constant 0 : index
    %c0_19 = arith.constant 0 : index
    %40 = vector.load %arg2[%c3, %c0_18, %c0_19] : memref<9x8x8xf32, #tpu.memory_space<vmem>>, vector<1x8x8xf32>
    %41 = vector.shape_cast %40 : vector<1x8x8xf32> to vector<8x8xf32>
    %cst_20 = arith.constant dense<0.000000e+00> : vector<8x256xf32>
    %42 = tpu.matmul %41, %39, %cst_20 {dimension_numbers = #tpu.dot_dimension_numbers<[1], [0], [0], [1], [0, 0, 1, 1], [], []>} : vector<8x8xf32>, vector<8x256xf32>, vector<8x256xf32> -> vector<8x256xf32>
    %43 = arith.addf %37, %42 : vector<8x256xf32>
    %c497_i32 = arith.constant 497 : i32
    %44 = tpu.dynamic_rotate %32 by %c497_i32 dim 1 : vector<8x512xf32>, i32 -> vector<8x512xf32>
    %45 = vector.extract_strided_slice %44 {offsets = [0, 128], sizes = [8, 256], strides = [1, 1]} : vector<8x512xf32> to vector<8x256xf32>
    %c6 = arith.constant 6 : index
    %c0_21 = arith.constant 0 : index
    %c0_22 = arith.constant 0 : index
    %46 = vector.load %arg2[%c6, %c0_21, %c0_22] : memref<9x8x8xf32, #tpu.memory_space<vmem>>, vector<1x8x8xf32>
    %47 = vector.shape_cast %46 : vector<1x8x8xf32> to vector<8x8xf32>
    %cst_23 = arith.constant dense<0.000000e+00> : vector<8x256xf32>
    %48 = tpu.matmul %47, %45, %cst_23 {dimension_numbers = #tpu.dot_dimension_numbers<[1], [0], [0], [1], [0, 0, 1, 1], [], []>} : vector<8x8xf32>, vector<8x256xf32>, vector<8x256xf32> -> vector<8x256xf32>
    %49 = arith.addf %43, %48 : vector<8x256xf32>
    %50 = vector.broadcast %27 : vector<1x256xf32> to vector<8x256xf32>
    %51 = arith.mulf %49, %50 : vector<8x256xf32>
    %c16_i32_24 = arith.constant 16 : i32
    %52 = tpu.dynamic_rotate %32 by %c16_i32_24 dim 1 : vector<8x512xf32>, i32 -> vector<8x512xf32>
    %53 = vector.extract_strided_slice %52 {offsets = [0, 128], sizes = [8, 256], strides = [1, 1]} : vector<8x512xf32> to vector<8x256xf32>
    %c1 = arith.constant 1 : index
    %c0_25 = arith.constant 0 : index
    %c0_26 = arith.constant 0 : index
    %54 = vector.load %arg2[%c1, %c0_25, %c0_26] : memref<9x8x8xf32, #tpu.memory_space<vmem>>, vector<1x8x8xf32>
    %55 = vector.shape_cast %54 : vector<1x8x8xf32> to vector<8x8xf32>
    %cst_27 = arith.constant dense<0.000000e+00> : vector<8x256xf32>
    %56 = tpu.matmul %55, %53, %cst_27 {dimension_numbers = #tpu.dot_dimension_numbers<[1], [0], [0], [1], [0, 0, 1, 1], [], []>} : vector<8x8xf32>, vector<8x256xf32>, vector<8x256xf32> -> vector<8x256xf32>
    %57 = vector.extract_strided_slice %32 {offsets = [0, 128], sizes = [8, 256], strides = [1, 1]} : vector<8x512xf32> to vector<8x256xf32>
    %c4 = arith.constant 4 : index
    %c0_28 = arith.constant 0 : index
    %c0_29 = arith.constant 0 : index
    %58 = vector.load %arg2[%c4, %c0_28, %c0_29] : memref<9x8x8xf32, #tpu.memory_space<vmem>>, vector<1x8x8xf32>
    %59 = vector.shape_cast %58 : vector<1x8x8xf32> to vector<8x8xf32>
    %cst_30 = arith.constant dense<0.000000e+00> : vector<8x256xf32>
    %60 = tpu.matmul %59, %57, %cst_30 {dimension_numbers = #tpu.dot_dimension_numbers<[1], [0], [0], [1], [0, 0, 1, 1], [], []>} : vector<8x8xf32>, vector<8x256xf32>, vector<8x256xf32> -> vector<8x256xf32>
    %61 = arith.addf %56, %60 : vector<8x256xf32>
    %c496_i32 = arith.constant 496 : i32
    %62 = tpu.dynamic_rotate %32 by %c496_i32 dim 1 : vector<8x512xf32>, i32 -> vector<8x512xf32>
    %63 = vector.extract_strided_slice %62 {offsets = [0, 128], sizes = [8, 256], strides = [1, 1]} : vector<8x512xf32> to vector<8x256xf32>
    %c7 = arith.constant 7 : index
    %c0_31 = arith.constant 0 : index
    %c0_32 = arith.constant 0 : index
    %64 = vector.load %arg2[%c7, %c0_31, %c0_32] : memref<9x8x8xf32, #tpu.memory_space<vmem>>, vector<1x8x8xf32>
    %65 = vector.shape_cast %64 : vector<1x8x8xf32> to vector<8x8xf32>
    %cst_33 = arith.constant dense<0.000000e+00> : vector<8x256xf32>
    %66 = tpu.matmul %65, %63, %cst_33 {dimension_numbers = #tpu.dot_dimension_numbers<[1], [0], [0], [1], [0, 0, 1, 1], [], []>} : vector<8x8xf32>, vector<8x256xf32>, vector<8x256xf32> -> vector<8x256xf32>
    %67 = arith.addf %61, %66 : vector<8x256xf32>
    %c15_i32_34 = arith.constant 15 : i32
    %68 = tpu.dynamic_rotate %32 by %c15_i32_34 dim 1 : vector<8x512xf32>, i32 -> vector<8x512xf32>
    %69 = vector.extract_strided_slice %68 {offsets = [0, 128], sizes = [8, 256], strides = [1, 1]} : vector<8x512xf32> to vector<8x256xf32>
    %c2 = arith.constant 2 : index
    %c0_35 = arith.constant 0 : index
    %c0_36 = arith.constant 0 : index
    %70 = vector.load %arg2[%c2, %c0_35, %c0_36] : memref<9x8x8xf32, #tpu.memory_space<vmem>>, vector<1x8x8xf32>
    %71 = vector.shape_cast %70 : vector<1x8x8xf32> to vector<8x8xf32>
    %cst_37 = arith.constant dense<0.000000e+00> : vector<8x256xf32>
    %72 = tpu.matmul %71, %69, %cst_37 {dimension_numbers = #tpu.dot_dimension_numbers<[1], [0], [0], [1], [0, 0, 1, 1], [], []>} : vector<8x8xf32>, vector<8x256xf32>, vector<8x256xf32> -> vector<8x256xf32>
    %c511_i32 = arith.constant 511 : i32
    %73 = tpu.dynamic_rotate %32 by %c511_i32 dim 1 : vector<8x512xf32>, i32 -> vector<8x512xf32>
    %74 = vector.extract_strided_slice %73 {offsets = [0, 128], sizes = [8, 256], strides = [1, 1]} : vector<8x512xf32> to vector<8x256xf32>
    %c5 = arith.constant 5 : index
    %c0_38 = arith.constant 0 : index
    %c0_39 = arith.constant 0 : index
    %75 = vector.load %arg2[%c5, %c0_38, %c0_39] : memref<9x8x8xf32, #tpu.memory_space<vmem>>, vector<1x8x8xf32>
    %76 = vector.shape_cast %75 : vector<1x8x8xf32> to vector<8x8xf32>
    %cst_40 = arith.constant dense<0.000000e+00> : vector<8x256xf32>
    %77 = tpu.matmul %76, %74, %cst_40 {dimension_numbers = #tpu.dot_dimension_numbers<[1], [0], [0], [1], [0, 0, 1, 1], [], []>} : vector<8x8xf32>, vector<8x256xf32>, vector<8x256xf32> -> vector<8x256xf32>
    %78 = arith.addf %72, %77 : vector<8x256xf32>
    %c495_i32 = arith.constant 495 : i32
    %79 = tpu.dynamic_rotate %32 by %c495_i32 dim 1 : vector<8x512xf32>, i32 -> vector<8x512xf32>
    %80 = vector.extract_strided_slice %79 {offsets = [0, 128], sizes = [8, 256], strides = [1, 1]} : vector<8x512xf32> to vector<8x256xf32>
    %c8 = arith.constant 8 : index
    %c0_41 = arith.constant 0 : index
    %c0_42 = arith.constant 0 : index
    %81 = vector.load %arg2[%c8, %c0_41, %c0_42] : memref<9x8x8xf32, #tpu.memory_space<vmem>>, vector<1x8x8xf32>
    %82 = vector.shape_cast %81 : vector<1x8x8xf32> to vector<8x8xf32>
    %cst_43 = arith.constant dense<0.000000e+00> : vector<8x256xf32>
    %83 = tpu.matmul %82, %80, %cst_43 {dimension_numbers = #tpu.dot_dimension_numbers<[1], [0], [0], [1], [0, 0, 1, 1], [], []>} : vector<8x8xf32>, vector<8x256xf32>, vector<8x256xf32> -> vector<8x256xf32>
    %84 = arith.addf %78, %83 : vector<8x256xf32>
    %85 = vector.broadcast %31 : vector<1x256xf32> to vector<8x256xf32>
    %86 = arith.mulf %84, %85 : vector<8x256xf32>
    %87 = arith.addf %51, %67 : vector<8x256xf32>
    %88 = arith.addf %87, %86 : vector<8x256xf32>
    %c0_44 = arith.constant 0 : index
    %c0_45 = arith.constant 0 : index
    %89 = vector.load %arg3[%c0_44, %c0_45] : memref<8x1xf32, #tpu.memory_space<vmem>>, vector<8x1xf32>
    %90 = vector.broadcast %89 : vector<8x1xf32> to vector<8x256xf32>
    %91 = arith.addf %88, %90 : vector<8x256xf32>
    %cst_46 = arith.constant 0.000000e+00 : f32
    %92 = vector.broadcast %cst_46 : f32 to vector<8x256xf32>
    %93 = arith.maximumf %91, %92 : vector<8x256xf32>
    %c0_47 = arith.constant 0 : index
    %c128_48 = arith.constant 128 : index
    %94 = vector.load %arg7[%c0_47, %c128_48] : memref<8x512xf32, #tpu.memory_space<vmem>>, vector<8x256xf32>
    tpu.vector_store %arg7[%c0_47, %c128_48], %93 {strides = array<i32>} : memref<8x512xf32, #tpu.memory_space<vmem>>, vector<8x256xf32>,
    %c0_49 = arith.constant 0 : index
    %c0_50 = arith.constant 0 : index
    %95 = vector.load %arg7[%c0_49, %c0_50] : memref<8x512xf32, #tpu.memory_space<vmem>>, vector<8x512xf32>
    %c17_i32_51 = arith.constant 17 : i32
    %96 = tpu.dynamic_rotate %95 by %c17_i32_51 dim 1 : vector<8x512xf32>, i32 -> vector<8x512xf32>
    %97 = vector.extract_strided_slice %96 {offsets = [0, 128], sizes = [8, 256], strides = [1, 1]} : vector<8x512xf32> to vector<8x256xf32>
    %c0_52 = arith.constant 0 : index
    %c0_53 = arith.constant 0 : index
    %c0_54 = arith.constant 0 : index
    %98 = vector.load %arg4[%c0_52, %c0_53, %c0_54] : memref<9x8x8xf32, #tpu.memory_space<vmem>>, vector<1x8x8xf32>
    %99 = vector.shape_cast %98 : vector<1x8x8xf32> to vector<8x8xf32>
    %cst_55 = arith.constant dense<0.000000e+00> : vector<8x256xf32>
    %100 = tpu.matmul %99, %97, %cst_55 {dimension_numbers = #tpu.dot_dimension_numbers<[1], [0], [0], [1], [0, 0, 1, 1], [], []>} : vector<8x8xf32>, vector<8x256xf32>, vector<8x256xf32> -> vector<8x256xf32>
    %c1_i32_56 = arith.constant 1 : i32
    %101 = tpu.dynamic_rotate %95 by %c1_i32_56 dim 1 : vector<8x512xf32>, i32 -> vector<8x512xf32>
    %102 = vector.extract_strided_slice %101 {offsets = [0, 128], sizes = [8, 256], strides = [1, 1]} : vector<8x512xf32> to vector<8x256xf32>
    %c3_57 = arith.constant 3 : index
    %c0_58 = arith.constant 0 : index
    %c0_59 = arith.constant 0 : index
    %103 = vector.load %arg4[%c3_57, %c0_58, %c0_59] : memref<9x8x8xf32, #tpu.memory_space<vmem>>, vector<1x8x8xf32>
    %104 = vector.shape_cast %103 : vector<1x8x8xf32> to vector<8x8xf32>
    %cst_60 = arith.constant dense<0.000000e+00> : vector<8x256xf32>
    %105 = tpu.matmul %104, %102, %cst_60 {dimension_numbers = #tpu.dot_dimension_numbers<[1], [0], [0], [1], [0, 0, 1, 1], [], []>} : vector<8x8xf32>, vector<8x256xf32>, vector<8x256xf32> -> vector<8x256xf32>
    %106 = arith.addf %100, %105 : vector<8x256xf32>
    %c497_i32_61 = arith.constant 497 : i32
    %107 = tpu.dynamic_rotate %95 by %c497_i32_61 dim 1 : vector<8x512xf32>, i32 -> vector<8x512xf32>
    %108 = vector.extract_strided_slice %107 {offsets = [0, 128], sizes = [8, 256], strides = [1, 1]} : vector<8x512xf32> to vector<8x256xf32>
    %c6_62 = arith.constant 6 : index
    %c0_63 = arith.constant 0 : index
    %c0_64 = arith.constant 0 : index
    %109 = vector.load %arg4[%c6_62, %c0_63, %c0_64] : memref<9x8x8xf32, #tpu.memory_space<vmem>>, vector<1x8x8xf32>
    %110 = vector.shape_cast %109 : vector<1x8x8xf32> to vector<8x8xf32>
    %cst_65 = arith.constant dense<0.000000e+00> : vector<8x256xf32>
    %111 = tpu.matmul %110, %108, %cst_65 {dimension_numbers = #tpu.dot_dimension_numbers<[1], [0], [0], [1], [0, 0, 1, 1], [], []>} : vector<8x8xf32>, vector<8x256xf32>, vector<8x256xf32> -> vector<8x256xf32>
    %112 = arith.addf %106, %111 : vector<8x256xf32>
    %113 = vector.broadcast %27 : vector<1x256xf32> to vector<8x256xf32>
    %114 = arith.mulf %112, %113 : vector<8x256xf32>
    %c16_i32_66 = arith.constant 16 : i32
    %115 = tpu.dynamic_rotate %95 by %c16_i32_66 dim 1 : vector<8x512xf32>, i32 -> vector<8x512xf32>
    %116 = vector.extract_strided_slice %115 {offsets = [0, 128], sizes = [8, 256], strides = [1, 1]} : vector<8x512xf32> to vector<8x256xf32>
    %c1_67 = arith.constant 1 : index
    %c0_68 = arith.constant 0 : index
    %c0_69 = arith.constant 0 : index
    %117 = vector.load %arg4[%c1_67, %c0_68, %c0_69] : memref<9x8x8xf32, #tpu.memory_space<vmem>>, vector<1x8x8xf32>
    %118 = vector.shape_cast %117 : vector<1x8x8xf32> to vector<8x8xf32>
    %cst_70 = arith.constant dense<0.000000e+00> : vector<8x256xf32>
    %119 = tpu.matmul %118, %116, %cst_70 {dimension_numbers = #tpu.dot_dimension_numbers<[1], [0], [0], [1], [0, 0, 1, 1], [], []>} : vector<8x8xf32>, vector<8x256xf32>, vector<8x256xf32> -> vector<8x256xf32>
    %120 = vector.extract_strided_slice %95 {offsets = [0, 128], sizes = [8, 256], strides = [1, 1]} : vector<8x512xf32> to vector<8x256xf32>
    %c4_71 = arith.constant 4 : index
    %c0_72 = arith.constant 0 : index
    %c0_73 = arith.constant 0 : index
    %121 = vector.load %arg4[%c4_71, %c0_72, %c0_73] : memref<9x8x8xf32, #tpu.memory_space<vmem>>, vector<1x8x8xf32>
    %122 = vector.shape_cast %121 : vector<1x8x8xf32> to vector<8x8xf32>
    %cst_74 = arith.constant dense<0.000000e+00> : vector<8x256xf32>
    %123 = tpu.matmul %122, %120, %cst_74 {dimension_numbers = #tpu.dot_dimension_numbers<[1], [0], [0], [1], [0, 0, 1, 1], [], []>} : vector<8x8xf32>, vector<8x256xf32>, vector<8x256xf32> -> vector<8x256xf32>
    %124 = arith.addf %119, %123 : vector<8x256xf32>
    %c496_i32_75 = arith.constant 496 : i32
    %125 = tpu.dynamic_rotate %95 by %c496_i32_75 dim 1 : vector<8x512xf32>, i32 -> vector<8x512xf32>
    %126 = vector.extract_strided_slice %125 {offsets = [0, 128], sizes = [8, 256], strides = [1, 1]} : vector<8x512xf32> to vector<8x256xf32>
    %c7_76 = arith.constant 7 : index
    %c0_77 = arith.constant 0 : index
    %c0_78 = arith.constant 0 : index
    %127 = vector.load %arg4[%c7_76, %c0_77, %c0_78] : memref<9x8x8xf32, #tpu.memory_space<vmem>>, vector<1x8x8xf32>
    %128 = vector.shape_cast %127 : vector<1x8x8xf32> to vector<8x8xf32>
    %cst_79 = arith.constant dense<0.000000e+00> : vector<8x256xf32>
    %129 = tpu.matmul %128, %126, %cst_79 {dimension_numbers = #tpu.dot_dimension_numbers<[1], [0], [0], [1], [0, 0, 1, 1], [], []>} : vector<8x8xf32>, vector<8x256xf32>, vector<8x256xf32> -> vector<8x256xf32>
    %130 = arith.addf %124, %129 : vector<8x256xf32>
    %c15_i32_80 = arith.constant 15 : i32
    %131 = tpu.dynamic_rotate %95 by %c15_i32_80 dim 1 : vector<8x512xf32>, i32 -> vector<8x512xf32>
    %132 = vector.extract_strided_slice %131 {offsets = [0, 128], sizes = [8, 256], strides = [1, 1]} : vector<8x512xf32> to vector<8x256xf32>
    %c2_81 = arith.constant 2 : index
    %c0_82 = arith.constant 0 : index
    %c0_83 = arith.constant 0 : index
    %133 = vector.load %arg4[%c2_81, %c0_82, %c0_83] : memref<9x8x8xf32, #tpu.memory_space<vmem>>, vector<1x8x8xf32>
    %134 = vector.shape_cast %133 : vector<1x8x8xf32> to vector<8x8xf32>
    %cst_84 = arith.constant dense<0.000000e+00> : vector<8x256xf32>
    %135 = tpu.matmul %134, %132, %cst_84 {dimension_numbers = #tpu.dot_dimension_numbers<[1], [0], [0], [1], [0, 0, 1, 1], [], []>} : vector<8x8xf32>, vector<8x256xf32>, vector<8x256xf32> -> vector<8x256xf32>
    %c511_i32_85 = arith.constant 511 : i32
    %136 = tpu.dynamic_rotate %95 by %c511_i32_85 dim 1 : vector<8x512xf32>, i32 -> vector<8x512xf32>
    %137 = vector.extract_strided_slice %136 {offsets = [0, 128], sizes = [8, 256], strides = [1, 1]} : vector<8x512xf32> to vector<8x256xf32>
    %c5_86 = arith.constant 5 : index
    %c0_87 = arith.constant 0 : index
    %c0_88 = arith.constant 0 : index
    %138 = vector.load %arg4[%c5_86, %c0_87, %c0_88] : memref<9x8x8xf32, #tpu.memory_space<vmem>>, vector<1x8x8xf32>
    %139 = vector.shape_cast %138 : vector<1x8x8xf32> to vector<8x8xf32>
    %cst_89 = arith.constant dense<0.000000e+00> : vector<8x256xf32>
    %140 = tpu.matmul %139, %137, %cst_89 {dimension_numbers = #tpu.dot_dimension_numbers<[1], [0], [0], [1], [0, 0, 1, 1], [], []>} : vector<8x8xf32>, vector<8x256xf32>, vector<8x256xf32> -> vector<8x256xf32>
    %141 = arith.addf %135, %140 : vector<8x256xf32>
    %c495_i32_90 = arith.constant 495 : i32
    %142 = tpu.dynamic_rotate %95 by %c495_i32_90 dim 1 : vector<8x512xf32>, i32 -> vector<8x512xf32>
    %143 = vector.extract_strided_slice %142 {offsets = [0, 128], sizes = [8, 256], strides = [1, 1]} : vector<8x512xf32> to vector<8x256xf32>
    %c8_91 = arith.constant 8 : index
    %c0_92 = arith.constant 0 : index
    %c0_93 = arith.constant 0 : index
    %144 = vector.load %arg4[%c8_91, %c0_92, %c0_93] : memref<9x8x8xf32, #tpu.memory_space<vmem>>, vector<1x8x8xf32>
    %145 = vector.shape_cast %144 : vector<1x8x8xf32> to vector<8x8xf32>
    %cst_94 = arith.constant dense<0.000000e+00> : vector<8x256xf32>
    %146 = tpu.matmul %145, %143, %cst_94 {dimension_numbers = #tpu.dot_dimension_numbers<[1], [0], [0], [1], [0, 0, 1, 1], [], []>} : vector<8x8xf32>, vector<8x256xf32>, vector<8x256xf32> -> vector<8x256xf32>
    %147 = arith.addf %141, %146 : vector<8x256xf32>
    %148 = vector.broadcast %31 : vector<1x256xf32> to vector<8x256xf32>
    %149 = arith.mulf %147, %148 : vector<8x256xf32>
    %150 = arith.addf %114, %130 : vector<8x256xf32>
    %151 = arith.addf %150, %149 : vector<8x256xf32>
    %c0_95 = arith.constant 0 : index
    %c0_96 = arith.constant 0 : index
    %152 = vector.load %arg5[%c0_95, %c0_96] : memref<8x1xf32, #tpu.memory_space<vmem>>, vector<8x1xf32>
    %153 = vector.broadcast %152 : vector<8x1xf32> to vector<8x256xf32>
    %154 = arith.addf %151, %153 : vector<8x256xf32>
    %cst_97 = arith.constant 0.000000e+00 : f32
    %155 = vector.broadcast %cst_97 : f32 to vector<8x256xf32>
    %156 = arith.maximumf %154, %155 : vector<8x256xf32>
    %c0_98 = arith.constant 0 : index
    %c0_99 = arith.constant 0 : index
    %c0_100 = arith.constant 0 : index
    %157 = vector.load %arg1[%c0_98, %c0_99, %c0_100] : memref<1x8x256xf32, #tpu.memory_space<vmem>>, vector<1x8x256xf32>
    %158 = vector.shape_cast %157 : vector<1x8x256xf32> to vector<8x256xf32>
    %159 = arith.addf %158, %156 : vector<8x256xf32>
    %c0_101 = arith.constant 0 : index
    %c0_102 = arith.constant 0 : index
    %c0_103 = arith.constant 0 : index
    %160 = vector.load %arg6[%c0_101, %c0_102, %c0_103] : memref<1x8x256xf32, #tpu.memory_space<vmem>>, vector<1x8x256xf32>
    %161 = vector.shape_cast %160 : vector<1x8x256xf32> to vector<8x256xf32>
    %162 = vector.shape_cast %159 : vector<8x256xf32> to vector<1x8x256xf32>
    tpu.vector_store %arg6[%c0_101, %c0_102, %c0_103], %162 {strides = array<i32>} : memref<1x8x256xf32, #tpu.memory_space<vmem>>, vector<1x8x256xf32>,
    return
  }
  func.func @transform_0(%arg0: i32) -> (i32, i32, i32) {
    %c0_i32 = arith.constant 0 : i32
    %c0_i32_0 = arith.constant 0 : i32
    %c0_i32_1 = arith.constant 0 : i32
    return %arg0, %c0_i32, %c0_i32_0 : i32, i32, i32
  }
  func.func @transform_1(%arg0: i32) -> (i32, i32, i32) {
    %c0_i32 = arith.constant 0 : i32
    %c0_i32_0 = arith.constant 0 : i32
    %c0_i32_1 = arith.constant 0 : i32
    %c0_i32_2 = arith.constant 0 : i32
    return %c0_i32, %c0_i32_0, %c0_i32_1 : i32, i32, i32
  }
  func.func @transform_2(%arg0: i32) -> (i32, i32) {
    %c0_i32 = arith.constant 0 : i32
    %c0_i32_0 = arith.constant 0 : i32
    %c0_i32_1 = arith.constant 0 : i32
    return %c0_i32, %c0_i32_0 : i32, i32
  }
  func.func @transform_3(%arg0: i32) -> (i32, i32, i32) {
    %c0_i32 = arith.constant 0 : i32
    %c0_i32_0 = arith.constant 0 : i32
    %c0_i32_1 = arith.constant 0 : i32
    %c0_i32_2 = arith.constant 0 : i32
    return %c0_i32, %c0_i32_0, %c0_i32_1 : i32, i32, i32
  }
  func.func @transform_4(%arg0: i32) -> (i32, i32) {
    %c0_i32 = arith.constant 0 : i32
    %c0_i32_0 = arith.constant 0 : i32
    %c0_i32_1 = arith.constant 0 : i32
    return %c0_i32, %c0_i32_0 : i32, i32
  }
  func.func @transform_5(%arg0: i32) -> (i32, i32, i32) {
    %c0_i32 = arith.constant 0 : i32
    %c0_i32_0 = arith.constant 0 : i32
    %c0_i32_1 = arith.constant 0 : i32
    return %arg0, %c0_i32, %c0_i32_0 : i32, i32, i32
  }
}

</mosaic_0001>

<bundles_post_ra>
// kernel: tpu_custom_call.1
= control target key start
LH: loop header
LB: loop body
LE: loop exit
PB: predicated region body
PF: predicated region fallthrough
CT: control target
= control target key end

     0   :  { %10 = vsyncpa [#allocation4], 0  ;;  %s2520_s0 = inlined_call_operand.vmem [shape: f32[2,8,256], index: 0, kind: input, shape index: {}]   ;;  %s2521_s1 = inlined_call_operand.vmem [shape: f32[9,8,8], index: 1, kind: input, shape index: {}]   ;;  %s2522_s2 = inlined_call_operand.vmem [shape: f32[8,1], index: 2, kind: input, shape index: {}]   ;;  %s2523_s3 = inlined_call_operand.vmem [shape: f32[9,8,8], index: 3, kind: input, shape index: {}]   ;;  %s2524_s4 = inlined_call_operand.vmem [shape: f32[8,1], index: 4, kind: input, shape index: {}]   ;;  %s2525_s5 = inlined_call_operand.hbm [shape: f32[2,8,256], index: 5, kind: output, shape index: {}]  }
   0x1   :  { %12 = vsyncpa [#allocation4 + $0x1], 0  ;;  %s2140_s18 = smov 0   ;;  %s2142_s19 = smov 0  }
   0x2   :  { %s2144_s20 = smov 0   ;;  %s2146_s21 = smov 0  }
   0x3 LB: > { %s2161_s22 = sadd.s32 4294967295, %s2097_s21   ;;  %s1909_s23 = sadd.s32 4294967294, %s2097_s21   ;;  %s2097_s21 = sphi %s2146_s21, %s2531_s21   ;;  %s2093_s20 = sphi %s2144_s20, %s2530_s20   ;;  %s2089_s19 = sphi %s2142_s19, %s2529_s19   ;;  %s2085_s18 = sphi %s2140_s18, %s2528_s18  }
   0x4   : > { %s2165_s24 = sadd.s32 1, %s2097_s21   ;;  %s135_s25 = sadd.s32 1, %s2093_s20 }
   0x5   : > { %s132_s26 = ssub.s32 %s2097_s21, %s2165_s24  ;;  %p145_p0 = scmp.ne.s32.totalorder %s2093_s20, %s2089_s19 }
   0x6   : > { %p133_p1 = scmp.eq.s32.totalorder %s132_s26, 0  ;;  %p146_p2 = scmp.eq.s32.totalorder %s2161_s22, 1 }
   0x7   : > { %p151_p3 = scmp.ne.s32.totalorder %s2089_s19, %s2085_s18  ;;  %p152_p4 = scmp.eq.s32.totalorder %s1909_s23, 1 }
   0x8   : > { %s2176_s27 = scalar_select %p133_p1, %s2093_s20, %s135_s25  }
   0x9   : > { %p2178_p5 = por %p146_p2, %p145_p0  ;;  %p2182_p6 = por %p152_p4, %p151_p3 }
   0xa   : > { %p1912_p7 = scmp.ge.s32.totalorder %s2097_s21, 1  ;;  %p190_p8 = scmp.lt.s32.totalorder %s2097_s21, 3 }
   0xc   : > { %p191_p9 = pnand %p1912_p7, %p190_p8 }
   0xd   : > { %p218_p10 = scmp.lt.s32.totalorder (!%p191_p9), %s2161_s22, 1  ;;  %v2099_v0 = vmov (!%p191_p9), 0.0   ;;  %s2100_s30 = smov (!%p191_p9), 1   ;;  %vm293_vm0 = vcmask (!%p191_p9), 64512   ;;  %v1926_v3 = vld [vmem:[%s2521_s1 + $0x20] sm:$0xff] (!%p191_p9)  ;;  %v2107_v4 = vmov (!%p191_p9), 0   ;;  %v229_v7 = vlaneseq (!%p191_p9) }
   0xe   : > { %194 = sbr.rel (%p191_p9) target bundleno = 809 (0x329), region = 40  ;;  %282 = vrot.lane.b32.xlu1 (!%p191_p9), %v2099_v0, %s2100_s30  ;;  %361 = vmatprep.mubr.f32.mxu0 (!%p191_p9), %v2099_v0  ;;  %s2101_s11 = smov (!%p191_p9), 17   ;;  %v1042_v5 = vld [vmem:[%s2522_s2] sm:$0xff] (!%p191_p9)  ;;  %v1920_v14 = vld [vmem:[%s2521_s1 + $0x18] sm:$0xff] (!%p191_p9)  ;;  %v1923_v30 = vld [vmem:[%s2521_s1 + $0x30] sm:$0xff] (!%p191_p9) }
   0xf   : > { %611 = vmatprep.mubr.f32.mxu1 (!%p191_p9), %v2099_v0  ;;  %s2102_s12 = smov (!%p191_p9), 113   ;;  %s2103_s13 = smov (!%p191_p9), 127   ;;  %2034 = vset.pattern.permute.xlu0 (!%p191_p9), %v2107_v4  ;;  %v2259_v8 = vand.u32 (!%p191_p9), 127, %v229_v7  ;;  %v281_v23 = vld [vmem:[%s2521_s1] sm:$0xff] (!%p191_p9)  ;;  %v1932_v35 = vld [vmem:[%s2521_s1 + $0x28] sm:$0xff] (!%p191_p9)  ;;  %v1931_v44 = vld [vmem:[%s2521_s1 + $0x10] sm:$0xff] (!%p191_p9) }
  0x10   : > { %s2104_s16 = smov (!%p191_p9), 16   ;;  %s2105_s17 = smov (!%p191_p9), 15   ;;  %v1925_v42 = vld [vmem:[%s2521_s1 + $0x8] sm:$0xff] (!%p191_p9)  ;;  %v1935_v52 = vld [vmem:[%s2521_s1 + $0x40] sm:$0xff] (!%p191_p9)  ;;  %v1929_v54 = vld [vmem:[%s2521_s1 + $0x38] sm:$0xff] (!%p191_p9) }
  0x11   : > { %s2106_s23 = smov (!%p191_p9), 112   ;;  %s2108_s25 = smov (!%p191_p9), 111   ;;  %vm288_vm1 = vcmp.lt.s32.totalorder (!%p191_p9), %v2259_v8, 1  ;;  %vm278_vm2 = vcmp.lt.s32.totalorder (!%p191_p9), %v2259_v8, 17  ;;  %vm448_vm3 = vcmp.lt.s32.totalorder (!%p191_p9), %v2259_v8, 113  ;;  %vm796_vm4 = vcmp.lt.s32.totalorder (!%p191_p9), %v2259_v8, 127 }
  0x12   : > { %vm537_vm5 = vcmp.lt.s32.totalorder (!%p191_p9), %v2259_v8, 16  ;;  %vm785_vm6 = vcmp.lt.s32.totalorder (!%p191_p9), %v2259_v8, 15  ;;  %vm698_vm7 = vcmp.lt.s32.totalorder (!%p191_p9), %v2259_v8, 112  ;;  %vm955_vm8 = vcmp.lt.s32.totalorder (!%p191_p9), %v2259_v8, 111  ;;  %s2109_s15 = smov (!%p191_p9), [#allocation3]  }
  0x13   : > { %v231_v58 = vadd.s32 (!%p191_p9), 128, %v2259_v8  ;;  %v236_v59 = vand.u32 (!%p191_p9), 15, %v2259_v8  ;;  %s2039_s26 = sshll.u32 (!%p191_p9), %s2109_s15, 4  ;;  %s2040_s26 = int_to_ptr.vmem [resolvable:$false] %s2039_s26 }
  0x15   : > { %s219_s6 = scalar_select %p218_p10, %s2161_s22, 1  ;;  %v243_v60 = vand.u32 15, %v231_v58  ;;  %vm256_vm9 = vcmp.ne.s32.totalorder %v236_v59, 0  ;;  %vm262_vm11 = vcmp.ne.s32.totalorder %v236_v59, 15 }
  0x16   : > { %v2344_v61 = vsel %vm256_vm9, 1.0, %v2099_v0 }
  0x17   : > { %s1959_s7 = sshll.u32 %s219_s6, 4  ;;  %vm257_vm10 = vcmp.ne.s32.totalorder %v243_v60, 0  ;;  %vm263_vm12 = vcmp.ne.s32.totalorder %v243_v60, 15  ;;  %v1948_v60 = vld [vmem:[%s2523_s3 + $0x10] sm:$0xff]  ;;  %s2041_s6 = scalar_lea.vmem %s2040_s26, 512 }
  0x18   : > { %s222_s10 = scalar_lea.vmem %s2520_s0, %s1959_s7  ;;  %v2347_v62 = vsel %vm257_vm10, 1.0, %v2099_v0 }
  0x19   : > { %v2197_v1 = vld [vmem:[%s222_s10] sm:$0xff]  ;;  %v2203_v2 = vld [vmem:[%s222_s10 + $0x8] sm:$0xff] }
  0x1a   : > { %274 = vrot.lane.b32.xlu1 %v2197_v1, %s2101_s11  ;;  %284 = vrot.lane.b32.xlu0 %v2197_v1, %s2100_s30 }
  0x1b   : > { %547 = vmatprep.subr.mxu1 %v2203_v2 }
  0x1c   : > { %548 = vmatpush1.msra.mxu1 %v2197_v1 }
  0x1d   : > { %1927 = vmatmul.mubr.msk.f32.vlgmr.msra.gmra.mrb[0].mxu1 %vm293_vm0, %v1926_v3  ;;  %v2350_v3 = vsel %vm262_vm11, 1.0, %v2099_v0 }
  0x1e   : > { %272 = vrot.lane.b32.xlu1 %v2099_v0, %s2101_s11  ;;  %286 = vrot.lane.b32.xlu0 %v2203_v2, %s2100_s30 }
  0x1f   : > { %685 = vmatprep.mubr.f32.mxu1 %v2099_v0 }
  0x22   : > { %446 = vrot.lane.b32.xlu1 %v2099_v0, %s2102_s12  ;;  %276 = vrot.lane.b32.xlu0 %v2203_v2, %s2101_s11 }
  0x26   : > { %792 = vrot.lane.b32.xlu1 %v2203_v2, %s2103_s13  ;;  %444 = vrot.lane.b32.xlu0 %v2203_v2, %s2102_s12 }
  0x2a   : > { %790 = vrot.lane.b32.xlu1 %v2197_v1, %s2103_s13  ;;  %442 = vrot.lane.b32.xlu0 %v2197_v1, %s2102_s12 }
  0x2e   : > { %535 = vrot.lane.b32.xlu1 %v2203_v2, %s2104_s16  ;;  %794 = vrot.lane.b32.xlu0 %v2099_v0, %s2103_s13 }
  0x32   : > { %783 = vrot.lane.b32.xlu1 %v2203_v2, %s2105_s17  ;;  %533 = vrot.lane.b32.xlu0 %v2197_v1, %s2104_s16 }
  0x36   : > { %779 = vrot.lane.b32.xlu1 %v2099_v0, %s2105_s17  ;;  %781 = vrot.lane.b32.xlu0 %v2197_v1, %s2105_s17 }
  0x3a   : > { %696 = vrot.lane.b32.xlu1 %v2099_v0, %s2106_s23  ;;  %531 = vrot.lane.b32.xlu0 %v2099_v0, %s2104_s16 }
  0x3e   : > { %953 = vrot.lane.b32.xlu1 %v2099_v0, %s2108_s25  ;;  %694 = vrot.lane.b32.xlu0 %v2203_v2, %s2106_s23 }
  0x42   : > { %949 = vrot.lane.b32.xlu1 %v2197_v1, %s2108_s25  ;;  %951 = vrot.lane.b32.xlu0 %v2203_v2, %s2108_s25 }
  0x46   : > { %692 = vrot.lane.b32.xlu0 %v2197_v1, %s2106_s23 }
  0x4a   : > { %1045 = vperm.xlu0 %2034, %v1042_v5  }
  0x4e   : > { %1067 = vrot.lane.b32.xlu0 %v2099_v0, %s2100_s30 }
  0x80   : > { %v283_v6 = vpop.permute.xlu1 %282 }
  0x8c   : > { %v275_v9 = vpop.permute.xlu1 %274  ;;  %v285_v10 = vpop.permute.xlu0 %284 }
  0x8d   : > { %v290_v15 = vsel %vm288_vm1, %v283_v6, %v285_v10  ;;  %v2354_v6 = vsel %vm263_vm12, 1.0, %v2099_v0 }
  0x90   : > { %v273_v11 = vpop.permute.xlu1 %272  ;;  %v287_v12 = vpop.permute.xlu0 %286 }
  0x91   : > { %v289_v13 = vsel %vm288_vm1, %v285_v10, %v287_v12  ;;  %v280_v19 = vsel %vm278_vm2, %v273_v11, %v275_v9 }
  0x92   : > { %297 = vmatprep.subr.mxu0 %v289_v13 }
  0x93   : > { %298 = vmatpush1.msra.mxu0 %v290_v15 }
  0x94   : > { %v447_v16 = vpop.permute.xlu1 %446  ;;  %1921 = vmatmul.mubr.msk.f32.vlgmr.msra.gmra.mrb[0].mxu0 %vm293_vm0, %v1920_v14  ;;  %v277_v17 = vpop.permute.xlu0 %276 }
  0x95   : > { %v279_v18 = vsel %vm278_vm2, %v275_v9, %v277_v17  ;;  %435 = vmatprep.mubr.f32.mxu0 %v2099_v0 }
  0x96   : > { %371 = vmatprep.subr.mxu0 %v279_v18 }
  0x97   : > { %372 = vmatpush1.msra.mxu0 %v280_v19 }
  0x98   : > { %v793_v20 = vpop.permute.xlu1 %792  ;;  %v445_v21 = vpop.permute.xlu0 %444 }
  0x99   : > { %v449_v22 = vsel %vm448_vm3, %v445_v21, %v447_v16 }
  0x9a   : > { %456 = vmatprep.subr.mxu0 %v449_v22  ;;  %v1943_v22 = vld [vmem:[%s2523_s3 + $0x20] sm:$0xff] }
  0x9c   : > { %v791_v24 = vpop.permute.xlu1 %790  ;;  %1922 = vmatmul.mubr.msk.f32.vlgmr.msra.gmra.mrb[0].mxu0 %vm293_vm0, %v281_v23  ;;  %v443_v25 = vpop.permute.xlu0 %442  ;;  %v1819_v23 = vld [vmem:[%s2524_s4] sm:$0xff] }
  0x9d   : > { %v450_v26 = vsel %vm448_vm3, %v443_v25, %v445_v21  ;;  %520 = vmatprep.mubr.f32.mxu0 %v2099_v0  ;;  %v798_v31 = vsel %vm796_vm4, %v791_v24, %v793_v20 }
  0x9e   : > { %457 = vmatpush1.msra.mxu0 %v450_v26 }
  0xa0   : > { %v536_v27 = vpop.permute.xlu1 %535  ;;  %v795_v28 = vpop.permute.xlu0 %794 }
  0xa1   : > { %v797_v29 = vsel %vm796_vm4, %v793_v20, %v795_v28 }
  0xa2   : > { %804 = vmatprep.subr.mxu0 %v797_v29 }
  0xa4   : > { %v784_v32 = vpop.permute.xlu1 %783  ;;  %1924 = vmatmul.mubr.msk.f32.vlgmr.msra.gmra.mrb[0].mxu0 %vm293_vm0, %v1923_v30  ;;  %v534_v33 = vpop.permute.xlu0 %533 }
  0xa5   : > { %805 = vmatpush1.msra.mxu0 %v798_v31  ;;  %v538_v34 = vsel %vm537_vm5, %v534_v33, %v536_v27  ;;  %868 = vmatprep.mubr.f32.mxu0 %v2099_v0 }
  0xa6   : > { %621 = vmatprep.subr.mxu1 %v538_v34 }
  0xa8   : > { %v780_v36 = vpop.permute.xlu1 %779  ;;  %1933 = vmatmul.mubr.msk.f32.vlgmr.msra.gmra.mrb[2].mxu0 %vm293_vm0, %v1932_v35  ;;  %v782_v37 = vpop.permute.xlu0 %781 }
  0xa9   : > { %v787_v38 = vsel %vm785_vm6, %v780_v36, %v782_v37  ;;  %v786_v39 = vsel %vm785_vm6, %v782_v37, %v784_v32  ;;  %942 = vmatprep.mubr.f32.mxu0 %v2099_v0  ;;  %v1937_v32 = vld [vmem:[%s2523_s3 + $0x18] sm:$0xff] }
  0xaa   : > { %878 = vmatprep.subr.mxu0 %v786_v39 }
  0xab   : > { %879 = vmatpush1.msra.mxu0 %v787_v38 }
  0xac   : > { %v697_v40 = vpop.permute.xlu1 %696  ;;  %v532_v41 = vpop.permute.xlu0 %531 }
  0xad   : > { %v539_v43 = vsel %vm537_vm5, %v532_v41, %v534_v33  ;;  %v1066_v41 = vld [vmem:[%s2523_s3] sm:$0xff] }
  0xae   : > { %622 = vmatpush1.msra.mxu1 %v539_v43 }
  0xaf   : > { %1928 = vmatmul.mubr.msk.f32.vlgmr.msra.gmra.mrb[0].mxu1 %vm293_vm0, %v1925_v42 }
  0xb0   : > { %v954_v45 = vpop.permute.xlu1 %953  ;;  %1934 = vmatmul.mubr.msk.f32.vlgmr.msra.gmra.mrb[2].mxu0 %vm293_vm0, %v1931_v44  ;;  %v695_v46 = vpop.permute.xlu0 %694  ;;  %770 = vmatprep.mubr.f32.mxu1 %v2099_v0 }
  0xb1   : > { %v699_v47 = vsel %vm698_vm7, %v695_v46, %v697_v40  ;;  %1027 = vmatprep.mubr.f32.mxu0 %v2099_v0 }
  0xb2   : > { %706 = vmatprep.subr.mxu1 %v699_v47  ;;  %v1940_v47 = vld [vmem:[%s2523_s3 + $0x30] sm:$0xff] }
  0xb4   : > { %v950_v48 = vpop.permute.xlu1 %949  ;;  %v952_v49 = vpop.permute.xlu0 %951 }
  0xb5   : > { %v957_v50 = vsel %vm955_vm8, %v950_v48, %v952_v49  ;;  %v956_v51 = vsel %vm955_vm8, %v952_v49, %v954_v45 }
  0xb6   : > { %963 = vmatprep.subr.mxu0 %v956_v51 }
  0xb7   : > { %964 = vmatpush1.msra.mxu0 %v957_v50 }
  0xb8   : > { %1936 = vmatmul.mubr.msk.f32.vlgmr.msra.gmra.mrb[2].mxu0 %vm293_vm0, %v1935_v52  ;;  %v693_v53 = vpop.permute.xlu0 %692  ;;  %v1949_v52 = vld [vmem:[%s2523_s3 + $0x28] sm:$0xff] }
  0xb9   : > { %v700_v55 = vsel %vm698_vm7, %v693_v53, %v695_v46  ;;  %1392 = vmatprep.mubr.f32.mxu0 %v2099_v0 }
  0xba   : > { %707 = vmatpush1.msra.mxu1 %v700_v55 }
  0xbb   : > { %1930 = vmatmul.mubr.msk.f32.vlgmr.msra.gmra.mrb[0].mxu1 %vm293_vm0, %v1929_v54 }
  0xbc   : > { %1144 = vmatprep.mubr.f32.mxu1 %v2099_v0 }
  0xc9   : > { %v1046_v15 = vpop.permute.xlu0 %1045 }
  0xcd   : > { %v1068_v24 = vpop.permute.xlu0 %1067 }
 0x177   : > { %v522_v56 = vpop.f32.mrb[0].mxu0 }
 0x178   : > { %v524_v57 = vpop.f32.mrb[1].mxu0  ;;  %v529_v5 = vmul.f32 %v2344_v61, %v522_v56  ;;  %v1942_v56 = vld [vmem:[%s2523_s3 + $0x8] sm:$0xff] }
 0x179   : > { %v530_v7 = vmul.f32 %v2347_v62, %v524_v57 }
 0x18b   : > { %v1029_v63 = vpop.f32.mrb[2].mxu0 }
 0x18c   : > { %v1031_v4 = vpop.f32.mrb[3].mxu0  ;;  %v1036_v10 = vmul.f32 %v2350_v3, %v1029_v63 }
 0x18d   : > { %v1037_v13 = vmul.f32 %v2354_v6, %v1031_v4 }
 0x18e   : > { %v772_v9 = vpop.f32.mrb[0].mxu1 }
 0x18f   : > { %v1038_v11 = vadd.f32 %v772_v9, %v529_v5  ;;  %v774_v12 = vpop.f32.mrb[1].mxu1  ;;  %v1946_v9 = vld [vmem:[%s2523_s3 + $0x38] sm:$0xff] }
 0x190   : > { %v1039_v14 = vadd.f32 %v774_v12, %v530_v7 }
 0x191   : > { %v1040_v16 = vadd.f32 %v1038_v11, %v1036_v10 }
 0x192   : > { %v1041_v17 = vadd.f32 %v1039_v14, %v1037_v13  ;;  %v1952_v14 = vld [vmem:[%s2523_s3 + $0x40] sm:$0xff] }
 0x193   : > { %v1048_v18 = vadd.f32 %v1046_v15, %v1040_v16 }
 0x194   : > { %v1049_v19 = vadd.f32 %v1046_v15, %v1041_v17 }
 0x195   : > { %v1050_v20 = vmax.f32 %v1048_v18, 0.0 }
 0x196   : > { %v1051_v21 = vmax.f32 %v1049_v19, 0.0 }
 0x197   : > { %1225 = vrot.lane.b32.xlu0 %v1050_v20, %s2102_s12  ;;  %1069 = vrot.lane.b32.xlu1 %v1050_v20, %s2100_s30 }
 0x198   : > { %1328 = vmatprep.subr.mxu0 %v1051_v21 }
 0x199   : > { %1329 = vmatpush1.msra.mxu0 %v1050_v20 }
 0x19a   : > { %1944 = vmatmul.mubr.msk.f32.vlgmr.msra.gmra.mrb[4].mxu0 %vm293_vm0, %v1943_v22 }
 0x19b   : > { %1060 = vrot.lane.b32.xlu1 %v1050_v20, %s2101_s11  ;;  %1062 = vrot.lane.b32.xlu0 %v1051_v21, %s2101_s11 }
 0x19c   : > { %1466 = vmatprep.mubr.f32.mxu0 %v2099_v0 }
 0x19f   : > { %1573 = vrot.lane.b32.xlu0 %v2099_v0, %s2103_s13  ;;  %1071 = vrot.lane.b32.xlu1 %v1051_v21, %s2100_s30 }
 0x1a3   : > { %1227 = vrot.lane.b32.xlu0 %v1051_v21, %s2102_s12  ;;  %1058 = vrot.lane.b32.xlu1 %v2099_v0, %s2101_s11 }
 0x1a7   : > { %1315 = vrot.lane.b32.xlu0 %v1050_v20, %s2104_s16  ;;  %1229 = vrot.lane.b32.xlu1 %v2099_v0, %s2102_s12  ;;  %s215_s12 = sand.u32 1, %s2089_s19  }
 0x1ab   : > { %1561 = vrot.lane.b32.xlu0 %v1050_v20, %s2105_s17  ;;  %1569 = vrot.lane.b32.xlu1 %v1050_v20, %s2103_s13 }
 0x1af   : > { %1313 = vrot.lane.b32.xlu0 %v2099_v0, %s2104_s16  ;;  %1559 = vrot.lane.b32.xlu1 %v2099_v0, %s2105_s17 }
 0x1b3   : > { %1475 = vrot.lane.b32.xlu0 %v1051_v21, %s2106_s23  ;;  %1571 = vrot.lane.b32.xlu1 %v1051_v21, %s2103_s13  ;;  %s1913_s13 = sshll.u32 %s215_s12, 4 }
 0x1b7   : > { %1729 = vrot.lane.b32.xlu0 %v1051_v21, %s2108_s25  ;;  %1317 = vrot.lane.b32.xlu1 %v1051_v21, %s2104_s16  ;;  %s1960_s16 = sshll.u32 %s2161_s22, 8  ;;  %s1836_s22 = scalar_lea.sflag [#allocation4], %s215_s12 }
 0x1b8   : > { %s2478_s10 = scalar_lea.hbm %s2525_s5, %s1960_s16 }
 0x1bb   : > { %1473 = vrot.lane.b32.xlu0 %v1050_v20, %s2106_s23  ;;  %1563 = vrot.lane.b32.xlu1 %v1051_v21, %s2105_s17  ;;  %s217_s17 = scalar_lea.vmem [#allocation3], %s1913_s13 }
 0x1bf   : > { %1822 = vperm.xlu0 %2034, %v1819_v23   ;;  %1477 = vrot.lane.b32.xlu1 %v2099_v0, %s2106_s23  ;;  %s1850_s23 = sshll.u32 %s217_s17, 4  ;;  %s2480_s23 = int_to_ptr.vmem [resolvable:$true] %s1850_s23 }
 0x1c0   : > { %s2035_s14 = scalar_lea.vmem %s2480_s23, 256  ;;  %p2042_p0 = scmp.lt.s32.totalorder %s2480_s23, %s2040_s26 }
 0x1c1   : > { %p2036_p11 = scmp.ne.s32.totalorder %s2480_s23, %s2035_s14  ;;  %p2043_p1 = scmp.lt.s32.totalorder %s2041_s6, %s2035_s14 }
 0x1c3   : > { %1731 = vrot.lane.b32.xlu1 %v2099_v0, %s2108_s25  ;;  %p2037_p12 = pnand %p2036_p11, %p2178_p5  ;;  %p2044_p2 = por %p2043_p1, %p2042_p0 }
 0x1c5   : > { %p2038_p13 = pneg %p2037_p12 }
 0x1c7   : > { %1727 = vrot.lane.b32.xlu1 %v1050_v20, %s2108_s25  ;;  %p2045_p3 = pnand %p2044_p2, %p2038_p13 }
 0x209   : > { %v1226_v25 = vpop.permute.xlu0 %1225  ;;  %v1070_v26 = vpop.permute.xlu1 %1069 }
 0x20a   : > { %v1074_v33 = vsel %vm288_vm1, %v1068_v24, %v1070_v26 }
 0x20d   : > { %v1061_v27 = vpop.permute.xlu1 %1060  ;;  %v1063_v28 = vpop.permute.xlu0 %1062 }
 0x20e   : > { %v1064_v34 = vsel %vm278_vm2, %v1061_v27, %v1063_v28 }
 0x211   : > { %v1574_v29 = vpop.permute.xlu0 %1573  ;;  %v1072_v30 = vpop.permute.xlu1 %1071 }
 0x212   : > { %v1073_v31 = vsel %vm288_vm1, %v1070_v26, %v1072_v30 }
 0x213   : > { %1080 = vmatprep.subr.mxu1 %v1073_v31 }
 0x214   : > { %1081 = vmatpush1.msra.mxu1 %v1074_v33 }
 0x215   : > { %v1228_v35 = vpop.permute.xlu0 %1227  ;;  %1938 = vmatmul.mubr.msk.f32.vlgmr.msra.gmra.mrb[2].mxu1 %vm293_vm0, %v1937_v32  ;;  %1154 = vmatprep.subr.mxu1 %v1064_v34  ;;  %v1059_v36 = vpop.permute.xlu1 %1058 }
 0x216   : > { %v1065_v37 = vsel %vm278_vm2, %v1059_v36, %v1061_v27  ;;  %1218 = vmatprep.mubr.f32.mxu1 %v2099_v0  ;;  %v1232_v42 = vsel %vm448_vm3, %v1226_v25, %v1228_v35 }
 0x217   : > { %1155 = vmatpush1.msra.mxu1 %v1065_v37 }
 0x219   : > { %v1316_v38 = vpop.permute.xlu0 %1315  ;;  %v1230_v39 = vpop.permute.xlu1 %1229 }
 0x21a   : > { %v1231_v40 = vsel %vm448_vm3, %v1228_v35, %v1230_v39 }
 0x21b   : > { %1238 = vmatprep.subr.mxu1 %v1231_v40 }
 0x21d   : > { %v1562_v43 = vpop.permute.xlu0 %1561  ;;  %1939 = vmatmul.mubr.msk.f32.vlgmr.msra.gmra.mrb[2].mxu1 %vm293_vm0, %v1066_v41  ;;  %v1570_v44 = vpop.permute.xlu1 %1569 }
 0x21e   : > { %1239 = vmatpush1.msra.mxu1 %v1232_v42  ;;  %1302 = vmatprep.mubr.f32.mxu1 %v2099_v0 }
 0x221   : > { %v1314_v45 = vpop.permute.xlu0 %1313  ;;  %v1560_v46 = vpop.permute.xlu1 %1559 }
 0x222   : > { %v1320_v57 = vsel %vm537_vm5, %v1314_v45, %v1316_v38  ;;  %v1566_v63 = vsel %vm785_vm6, %v1560_v46, %v1562_v43 }
 0x225   : > { %v1476_v48 = vpop.permute.xlu0 %1475  ;;  %1941 = vmatmul.mubr.msk.f32.vlgmr.msra.gmra.mrb[2].mxu1 %vm293_vm0, %v1940_v47  ;;  %v1572_v49 = vpop.permute.xlu1 %1571 }
 0x226   : > { %v1576_v50 = vsel %vm796_vm4, %v1570_v44, %v1572_v49  ;;  %v1575_v51 = vsel %vm796_vm4, %v1572_v49, %v1574_v29  ;;  %1646 = vmatprep.mubr.f32.mxu1 %v2099_v0 }
 0x227   : > { %1582 = vmatprep.subr.mxu1 %v1575_v51 }
 0x228   : > { %1583 = vmatpush1.msra.mxu1 %v1576_v50 }
 0x229   : > { %v1318_v53 = vpop.permute.xlu1 %1317  ;;  %1950 = vmatmul.mubr.msk.f32.vlgmr.msra.gmra.mrb[4].mxu1 %vm293_vm0, %v1949_v52  ;;  %v1730_v54 = vpop.permute.xlu0 %1729 }
 0x22a   : > { %v1319_v55 = vsel %vm537_vm5, %v1316_v38, %v1318_v53  ;;  %1720 = vmatprep.mubr.f32.mxu1 %v2099_v0 }
 0x22b   : > { %1402 = vmatprep.subr.mxu0 %v1319_v55 }
 0x22c   : > { %1403 = vmatpush1.msra.mxu0 %v1320_v57 }
 0x22d   : > { %v1564_v58 = vpop.permute.xlu1 %1563  ;;  %1945 = vmatmul.mubr.msk.f32.vlgmr.msra.gmra.mrb[4].mxu0 %vm293_vm0, %v1942_v56  ;;  %v1474_v4 = vpop.permute.xlu0 %1473 }
 0x22e   : > { %v1565_v59 = vsel %vm785_vm6, %v1562_v43, %v1564_v58  ;;  %1550 = vmatprep.mubr.f32.mxu0 %v2099_v0  ;;  %v1480_v10 = vsel %vm698_vm7, %v1474_v4, %v1476_v48 }
 0x22f   : > { %1656 = vmatprep.subr.mxu1 %v1565_v59 }
 0x230   : > { %1657 = vmatpush1.msra.mxu1 %v1566_v63 }
 0x231   : > { %v1478_v5 = vpop.permute.xlu1 %1477  ;;  %1951 = vmatmul.mubr.msk.f32.vlgmr.msra.gmra.mrb[4].mxu1 %vm293_vm0, %v1948_v60 }
 0x232   : > { %v1479_v7 = vsel %vm698_vm7, %v1476_v48, %v1478_v5  ;;  %1804 = vmatprep.mubr.f32.mxu1 %v2099_v0 }
 0x233   : > { %1486 = vmatprep.subr.mxu0 %v1479_v7 }
 0x234   : > { %1487 = vmatpush1.msra.mxu0 %v1480_v10 }
 0x235   : > { %v1732_v11 = vpop.permute.xlu1 %1731  ;;  %1947 = vmatmul.mubr.msk.f32.vlgmr.msra.gmra.mrb[4].mxu0 %vm293_vm0, %v1946_v9 }
 0x236   : > { %v1733_v12 = vsel %vm955_vm8, %v1730_v54, %v1732_v11 }
 0x237   : > { %1740 = vmatprep.subr.mxu1 %v1733_v12 }
 0x239   : > { %v1728_v13 = vpop.permute.xlu1 %1727 }
 0x23a   : > { %v1734_v0 = vsel %vm955_vm8, %v1728_v13, %v1730_v54 }
 0x23b   : > { %1741 = vmatpush1.msra.mxu1 %v1734_v0 }
 0x23c   : > { %1953 = vmatmul.mubr.msk.f32.vlgmr.msra.gmra.mrb[4].mxu1 %vm293_vm0, %v1952_v14 }
 0x23e   : > { %v1823_v27 = vpop.permute.xlu0 %1822 }
 0x2f8   : > { %v1304_v15 = vpop.f32.mrb[2].mxu1 }
 0x2f9   : > { %v1306_v16 = vpop.f32.mrb[3].mxu1  ;;  %v1311_v17 = vmul.f32 %v2344_v61, %v1304_v15 }
 0x2fa   : > { %v1312_v18 = vmul.f32 %v2347_v62, %v1306_v16 }
 0x308   : > { %v1552_v19 = vpop.f32.mrb[4].mxu0 }
 0x309   : > { %v1815_v20 = vadd.f32 %v1552_v19, %v1311_v17  ;;  %v1554_v21 = vpop.f32.mrb[5].mxu0 }
 0x30a   : > { %v1816_v22 = vadd.f32 %v1554_v21, %v1312_v18 }
 0x30f   : > { %v1806_v23 = vpop.f32.mrb[4].mxu1 }
 0x310   : > { %v1813_v24 = vmul.f32 %v2350_v3, %v1806_v23  ;;  %v1808_v8 = vpop.f32.mrb[5].mxu1 }
 0x311   : > { %v1814_v25 = vmul.f32 %v2354_v6, %v1808_v8 }
 0x312   : > { %v1817_v26 = vadd.f32 %v1815_v20, %v1813_v24 }
 0x313   : > { %v1818_v28 = vadd.f32 %v1816_v22, %v1814_v25 }
 0x314   : > { %v1825_v29 = vadd.f32 %v1823_v27, %v1817_v26 }
 0x315   : > { %v1826_v61 = vadd.f32 %v1823_v27, %v1818_v28 }
 0x316   : > { %v1827_v62 = vmax.f32 %v1825_v29, 0.0 }
 0x317   : > { %v1828_v30 = vmax.f32 %v1826_v61, 0.0 }
 0x318   : > { %v1831_v31 = vadd.f32 %v1827_v62, %v2197_v1 }
 0x319   : > { %v1832_v32 = vadd.f32 %v1828_v30, %v2203_v2 }
 0x31a   : > { %1833 = vst [vmem:[%s217_s17] sm:$0xff] %v1831_v31 }
 0x31b   : > { %1834 = vst [vmem:[%s217_s17 + $0x8] sm:$0xff] %v1832_v32 }
 0x31c   : > { %2048 = shalt.err (!%p2045_p3)
}
 0x31d   : > { %s2049_s7 = scalar_lea.hbm %s2478_s10, 256  ;;  %s2053_s11 = scalar_lea.hbm %s2525_s5, 512 }
 0x31e   : > { %p2050_p4 = scmp.ne.s32.totalorder %s2478_s10, %s2049_s7  ;;  %p2054_p9 = scmp.lt.u32.totalorder %s2478_s10, %s2525_s5 }
 0x31f   : > { %p2055_p10 = scmp.lt.u32.totalorder %s2053_s11, %s2049_s7  ;;  %p2057_p12 = scmp.lt.u32.totalorder %s2049_s7, %s2478_s10 }
 0x320   : > { %p2051_p7 = pnand %p2050_p4, %p2178_p5 }
 0x321   : > { %p2056_p11 = por %p2055_p10, %p2054_p9 }
 0x322   : > { %p2052_p8 = pneg %p2051_p7 }
 0x323   : > { %p2058_p13 = por %p2057_p12, %p2056_p11 }
 0x325   : > { %p2059_p0 = pnand %p2058_p13, %p2052_p8 }
 0x327   : > { %2062 = shalt.err (!%p2059_p0)
}
 0x328   : > { %1985 = dma.vmem_to_hbm [thread:$0]  (%p2178_p5), %s2480_s23, 256, %s2478_s10, %s1836_s22  }
 0x329 PF: > { %p1991_p1 = scmp.ge.s32.totalorder %s2097_s21, 2  ;;  %s1862_s16 = sand.u32 1, %s2085_s18  }
 0x32a   : > { %s1863_s17 = scalar_lea.sflag [#allocation4], %s1862_s16 }
 0x32b   : > { %p1988_p2 = pnand %p1991_p1, %p2182_p6 }
 0x32d   : > { %2080 = dma.done.wait (!%p1988_p2), %s1863_s17, 256  }
 0x32e   : > { %2082 = vsyncadd (!%p1988_p2), %s1863_s17, 4294967040  ;;  %p15_p3 = scmp.ge.s32.totalorder %s2165_s24, 4   ;;  %s2528_s18 = smov %s2089_s19 }
 0x32f   : > { %s2529_s19 = smov %s2093_s20  ;;  %s2530_s20 = smov %s2176_s27 }
 0x330   : > { %s2531_s21 = smov %s2165_s24  ;;  %17 = sbr.rel (!%p15_p3) target bundleno = 3 (0x3), region = 91 }
 0x337   :  { %1868 = vsyncpa [#allocation4], 1 }
 0x338   :  { %1870 = vsyncpa [#allocation4 + $0x1], 1 }

</bundles_post_ra>
